<compile_context>
chip_gen: v6e
topology: v6e:2x2x1
jax: 0.10.0
libtpu: 0.0.40
codegen_flags: <defaults>
</compile_context>

<pallas_src>
import functools

import jax
import jax.numpy as jnp
from jax import lax
from jax.experimental import pallas as pl
from jax.experimental.pallas import tpu as pltpu


def _mlp_kernel(x_ref, w1_ref, b1_ref, w2_ref, b2_ref, w3_ref, b3_ref, o_ref,
                *, epi_dtype):
    # x arrives in natural (block_b, D_in) f32 layout; cast to bf16 in-kernel.
    x_bf = x_ref[...].astype(jnp.bfloat16)                       # (block_b, D_in)

    # fc1 + ReLU: (H1, D_in) . (block_b, D_in)^T -> (H1, block_b).
    # Batch rides the 128-lane axis, so all intermediates and the final store
    # are lane-dense.  bf16 MXU feed, f32 accumulation.
    h1 = lax.dot_general(w1_ref[...], x_bf,
                         dimension_numbers=(((1,), (1,)), ((), ())),
                         preferred_element_type=jnp.float32)     # (H1, block_b) f32
    h1 = jnp.maximum(h1.astype(epi_dtype) + b1_ref[...].astype(epi_dtype), 0.0)

    # fc2 + ReLU.
    h2 = jnp.dot(w2_ref[...], h1.astype(jnp.bfloat16),
                 preferred_element_type=jnp.float32)             # (H2, block_b) f32
    h2 = jnp.maximum(h2.astype(epi_dtype) + b2_ref[...].astype(epi_dtype), 0.0)

    # fc3 (out_features=1): VPU multiply + sublane reduce instead of a
    # degenerate 1-row MXU matmul; the (1, block_b) result is lane-dense.
    z = jnp.sum(h2.astype(jnp.float32) * w3_ref[...], axis=0, keepdims=True)
    z = z + b3_ref[0]
    o_ref[...] = jax.nn.sigmoid(z).astype(o_ref.dtype)


# 16K rows -> 2 MiB x tile (f32, D_in=32); h1/h2 temps + double-buffered x stay
# ~<= 16 MiB, comfortably inside the 32 MiB scoped VMEM on v5e/v6e/v7x.
_MAX_BLOCK_B = 16 * 1024


def _device_kind():
    try:
        return jax.devices()[0].device_kind.lower()
    except Exception:
        return ""


def _num_tensorcores():
    # v7x has 2 TensorCores per chip; v5e/v6e have 1.
    return 2 if "v7" in _device_kind() else 1


def _default_epilogue_dtype():
    # v6e/v7x have a bf16 VALU: packed bf16 bias+ReLU halves VPU element-ops
    # and the h1/h2 VMEM temps.  v5e (and older) keep the epilogue in f32.
    kind = _device_kind()
    return jnp.bfloat16 if ("v6" in kind or "v7" in kind) else jnp.float32


def _pick_block_b(B, num_cores):
    """Largest lane-aligned tile that divides B, keeps VMEM in budget
    (block_b <= _MAX_BLOCK_B) and gives a grid-step count that is a multiple of
    the TensorCore count (balanced dual-TC sharding on v7x).  Prefers >= 2
    steps per core (per-core DMA/compute overlap) once tiles are large; small
    batches on single-TC chips run as one whole-batch step (no per-step
    overhead)."""
    if B % 128 != 0:
        return B                       # odd/tiny batch: single untiled step
    best = None
    cand = min(B, _MAX_BLOCK_B)
    cand -= cand % 128
    while cand >= 128:
        if B % cand == 0:
            steps = B // cand
            if steps % num_cores == 0:
                if best is None:
                    best = cand
                if steps >= 2 * num_cores or cand <= 4096:
                    return cand
        cand -= 128
    return best if best is not None else B


def simple_nn_forward(x, w1, b1, w2, b2, w3, b3, *, block_b=None,
                      epi_dtype=None, out_layout="col", x_buffers=None):
    """x: (B, D_in) row-major f32 (PyTorch convention); weights in PyTorch
    nn.Linear layout (out_features, in_features); biases (out, 1) columns.
    out_layout="col" returns (B, 1) (module semantics, costs one relayout);
    out_layout="row" returns the lane-dense (1, B) kernel output directly."""
    B, D_in = x.shape
    H1 = w1.shape[0]
    H2 = w2.shape[0]
    assert w1.shape == (H1, D_in) and w2.shape == (H2, H1)
    assert w3.shape == (1, H2)

    num_cores = _num_tensorcores()
    if block_b is None:
        block_b = _pick_block_b(B, num_cores)
    if epi_dtype is None:
        epi_dtype = _default_epilogue_dtype()
    assert B % block_b == 0, "block_b must divide the batch"
    assert block_b == B or block_b % 128 == 0, "block_b must be a multiple of 128"

    grid = (B // block_b,)

    # Tiny host-side prep only (weights ~17 KiB); x is passed through untouched.
    w1_bf = w1.astype(jnp.bfloat16)                       # (H1, D_in)
    w2_bf = w2.astype(jnp.bfloat16)                       # (H2, H1)
    b1_c = b1.reshape(H1, 1).astype(jnp.float32)
    b2_c = b2.reshape(H2, 1).astype(jnp.float32)
    w3_c = w3.reshape(H2, 1).astype(jnp.float32)          # column for VPU reduce
    b3_s = b3.reshape(1).astype(jnp.float32)              # SMEM scalar

    # Whole-array (constant index_map) specs: DMA'd once, VMEM-resident.
    def _full_spec(shape):
        return pl.BlockSpec(shape, lambda i: tuple(0 for _ in shape))

    x_spec_kwargs = {}
    if x_buffers is not None:
        # Optional pipeline-depth sweep knob (feedback item); default buffering
        # (2) is used unless explicitly requested.
        x_spec_kwargs["pipeline_mode"] = pl.Buffered(x_buffers)
    x_spec = pl.BlockSpec((block_b, D_in), lambda i: (i, 0), **x_spec_kwargs)

    out_row = pl.pallas_call(
        functools.partial(_mlp_kernel, epi_dtype=epi_dtype),
        out_shape=jax.ShapeDtypeStruct((1, B), jnp.float32),
        grid_spec=pltpu.PrefetchScalarGridSpec(
            num_scalar_prefetch=0,
            grid=grid,
            in_specs=[
                x_spec,                                             # x tile (f32)
                _full_spec((H1, D_in)),                             # W1 (bf16)
                _full_spec((H1, 1)),                                # b1 (f32)
                _full_spec((H2, H1)),                               # W2 (bf16)
                _full_spec((H2, 1)),                                # b2 (f32)
                _full_spec((H2, 1)),                                # w3 col (f32)
                pl.BlockSpec(memory_space=pltpu.MemorySpace.SMEM),  # b3 scalar
            ],
            out_specs=pl.BlockSpec((1, block_b), lambda i: (0, i)),
        ),
        compiler_params=pltpu.CompilerParams(
            dimension_semantics=("parallel",),          # dual-TC sharding on v7x
            vmem_limit_bytes=32 * 1024 * 1024,
        ),
    )(x, w1_bf, b1_c, w2_bf, b2_c, w3_c, b3_s)

    if out_layout == "row":
        return out_row                       # (1, B), no relayout
    # (1, B) -> (B, 1) flips lane/sublane majorness: one host-side relayout,
    # kept only to match the PyTorch module's output shape.
    return out_row.reshape(B, 1)


def init_params(key, input_dim):
    # Deterministic init mimicking nn.Linear default, PyTorch layout
    # W: (out_features, in_features), b: (out_features, 1).
    dims = [(input_dim, 64), (64, 32), (32, 1)]
    params = []
    for fan_in, fan_out in dims:
        kw, kb, key = jax.random.split(key, 3)
        bound = 1.0 / jnp.sqrt(fan_in)
        w = jax.random.uniform(kw, (fan_out, fan_in), jnp.float32, -bound, bound)
        b = jax.random.uniform(kb, (fan_out, 1), jnp.float32, -bound, bound)
        params += [w, b]
    return params


if __name__ == "__main__":
    key = jax.random.PRNGKey(0)
    k_x, k_p = jax.random.split(key)

    batch, input_dim = 256, 32
    x = jax.random.normal(k_x, (batch, input_dim), jnp.float32)
    w1, b1, w2, b2, w3, b3 = init_params(k_p, input_dim)

    out = simple_nn_forward(x, w1, b1, w2, b2, w3, b3)
    out = jax.block_until_ready(out)

    # sanity: shape and sigmoid range
    assert out.shape == (batch, 1)
    assert bool(jnp.all((out >= 0.0) & (out <= 1.0)))

    # Reference that mirrors the kernel's exact numerics (bf16 MXU feed and the
    # generation-dependent epilogue dtype).
    epi = _default_epilogue_dtype()
    a1 = jnp.dot(x.astype(jnp.bfloat16), w1.T.astype(jnp.bfloat16),
                 preferred_element_type=jnp.float32)
    h1 = jnp.maximum(a1.astype(epi) + b1.reshape(1, -1).astype(epi), 0.0)
    a2 = jnp.dot(h1.astype(jnp.bfloat16), w2.T.astype(jnp.bfloat16),
                 preferred_element_type=jnp.float32)
    h2 = jnp.maximum(a2.astype(epi) + b2.reshape(1, -1).astype(epi), 0.0)
    z = jnp.sum(h2.astype(jnp.float32) * w3.reshape(1, -1),
                axis=1, keepdims=True) + b3.reshape(1, 1)
    ref_matched = jax.nn.sigmoid(z)
    assert bool(jnp.allclose(out, ref_matched, atol=2e-3, rtol=2e-3))

    # Full-f32 reference for module semantics (looser tol: bf16 MXU trade-off).
    r1 = jnp.maximum(x @ w1.T + b1.T, 0.0)
    r2 = jnp.maximum(r1 @ w2.T + b2.T, 0.0)
    ref_f32 = jax.nn.sigmoid(r2 @ w3.T + b3.T)
    assert bool(jnp.allclose(out, ref_f32, atol=3e-2))

    print("KERNEL_OK")
</pallas_src>

<mosaic_0001>
module attributes {stable_mosaic.version = 11 : i64} {
  func.func @_mlp_kernel(%arg0: i32, %arg1: memref<256x32xf32, #tpu.memory_space<vmem>>, %arg2: memref<64x32xbf16, #tpu.memory_space<vmem>>, %arg3: memref<64x1xf32, #tpu.memory_space<vmem>>, %arg4: memref<32x64xbf16, #tpu.memory_space<vmem>>, %arg5: memref<32x1xf32, #tpu.memory_space<vmem>>, %arg6: memref<32x1xf32, #tpu.memory_space<vmem>>, %arg7: memref<1xf32, #tpu.memory_space<smem>>, %arg8: memref<1x256xf32, #tpu.memory_space<vmem>>) attributes {dimension_semantics = [#tpu.dimension_semantics<parallel>], iteration_bounds = array<i64: 1>, scalar_prefetch = 0 : i64, scratch_operands = 0 : i64, tpu.core_type = #tpu.core_type<tc>, window_params = [{transform_indices = @transform_0, window_bounds = array<i64: 256, 32>}, {pipeline_mode = #tpu.pipeline_mode<synchronous>, transform_indices = @transform_1, window_bounds = array<i64: 64, 32>}, {pipeline_mode = #tpu.pipeline_mode<synchronous>, transform_indices = @transform_2, window_bounds = array<i64: 64, 1>}, {pipeline_mode = #tpu.pipeline_mode<synchronous>, transform_indices = @transform_3, window_bounds = array<i64: 32, 64>}, {pipeline_mode = #tpu.pipeline_mode<synchronous>, transform_indices = @transform_4, window_bounds = array<i64: 32, 1>}, {pipeline_mode = #tpu.pipeline_mode<synchronous>, transform_indices = @transform_5, window_bounds = array<i64: 32, 1>}, {transform_indices = @transform_6, window_bounds = array<i64: 1>}, {transform_indices = @transform_7, window_bounds = array<i64: 1, 256>}]} {
    %c0 = arith.constant 0 : index
    %c0_0 = arith.constant 0 : index
    %0 = vector.load %arg1[%c0, %c0_0] : memref<256x32xf32, #tpu.memory_space<vmem>>, vector<256x32xf32>
    %1 = arith.truncf %0 : vector<256x32xf32> to vector<256x32xbf16>
    %c0_1 = arith.constant 0 : index
    %c0_2 = arith.constant 0 : index
    %2 = vector.load %arg2[%c0_1, %c0_2] : memref<64x32xbf16, #tpu.memory_space<vmem>>, vector<64x32xbf16>
    %cst = arith.constant dense<0.000000e+00> : vector<64x256xf32>
    %3 = tpu.matmul %2, %1, %cst {dimension_numbers = #tpu.dot_dimension_numbers<[1], [1], [0], [0], [0, 0, 1, 0], [], []>} : vector<64x32xbf16>, vector<256x32xbf16>, vector<64x256xf32> -> vector<64x256xf32>
    %c0_3 = arith.constant 0 : index
    %c0_4 = arith.constant 0 : index
    %4 = vector.load %arg3[%c0_3, %c0_4] : memref<64x1xf32, #tpu.memory_space<vmem>>, vector<64x1xf32>
    %5 = vector.broadcast %4 : vector<64x1xf32> to vector<64x256xf32>
    %6 = arith.addf %3, %5 : vector<64x256xf32>
    %cst_5 = arith.constant 0.000000e+00 : f32
    %7 = vector.broadcast %cst_5 : f32 to vector<64x256xf32>
    %8 = arith.maximumf %6, %7 : vector<64x256xf32>
    %c0_6 = arith.constant 0 : index
    %c0_7 = arith.constant 0 : index
    %9 = vector.load %arg4[%c0_6, %c0_7] : memref<32x64xbf16, #tpu.memory_space<vmem>>, vector<32x64xbf16>
    %10 = arith.truncf %8 : vector<64x256xf32> to vector<64x256xbf16>
    %cst_8 = arith.constant dense<0.000000e+00> : vector<32x256xf32>
    %11 = tpu.matmul %9, %10, %cst_8 {dimension_numbers = #tpu.dot_dimension_numbers<[1], [0], [0], [1], [0, 0, 1, 1], [], []>} : vector<32x64xbf16>, vector<64x256xbf16>, vector<32x256xf32> -> vector<32x256xf32>
    %c0_9 = arith.constant 0 : index
    %c0_10 = arith.constant 0 : index
    %12 = vector.load %arg5[%c0_9, %c0_10] : memref<32x1xf32, #tpu.memory_space<vmem>>, vector<32x1xf32>
    %13 = vector.broadcast %12 : vector<32x1xf32> to vector<32x256xf32>
    %14 = arith.addf %11, %13 : vector<32x256xf32>
    %cst_11 = arith.constant 0.000000e+00 : f32
    %15 = vector.broadcast %cst_11 : f32 to vector<32x256xf32>
    %16 = arith.maximumf %14, %15 : vector<32x256xf32>
    %c0_12 = arith.constant 0 : index
    %c0_13 = arith.constant 0 : index
    %17 = vector.load %arg6[%c0_12, %c0_13] : memref<32x1xf32, #tpu.memory_space<vmem>>, vector<32x1xf32>
    %18 = vector.broadcast %17 : vector<32x1xf32> to vector<32x256xf32>
    %19 = arith.mulf %16, %18 : vector<32x256xf32>
    %cst_14 = arith.constant dense<0.000000e+00> : vector<256xf32>
    %20 = vector.multi_reduction <add>, %19, %cst_14 [0] : vector<32x256xf32> to vector<256xf32>
    %21 = vector.shape_cast %20 : vector<256xf32> to vector<1x256xf32>
    %c0_15 = arith.constant 0 : index
    %22 = memref.load %arg7[%c0_15] : memref<1xf32, #tpu.memory_space<smem>>
    %23 = vector.broadcast %22 : f32 to vector<1x256xf32>
    %24 = arith.addf %21, %23 : vector<1x256xf32>
    %25 = arith.negf %24 : vector<1x256xf32>
    %26 = math.exp %25 : vector<1x256xf32>
    %cst_16 = arith.constant 1.000000e+00 : f32
    %27 = vector.broadcast %cst_16 : f32 to vector<1x256xf32>
    %28 = arith.addf %27, %26 : vector<1x256xf32>
    %29 = arith.divf %27, %28 : vector<1x256xf32>
    %c0_17 = arith.constant 0 : index
    %c0_18 = arith.constant 0 : index
    %30 = vector.load %arg8[%c0_17, %c0_18] : memref<1x256xf32, #tpu.memory_space<vmem>>, vector<1x256xf32>
    tpu.vector_store %arg8[%c0_17, %c0_18], %29 {strides = array<i32>} : memref<1x256xf32, #tpu.memory_space<vmem>>, vector<1x256xf32>,
    return
  }
  func.func @transform_0(%arg0: i32) -> (i32, i32) {
    %c0_i32 = arith.constant 0 : i32
    %c0_i32_0 = arith.constant 0 : i32
    return %arg0, %c0_i32 : i32, i32
  }
  func.func @transform_1(%arg0: i32) -> (i32, i32) {
    %c0_i32 = arith.constant 0 : i32
    %c0_i32_0 = arith.constant 0 : i32
    %c0_i32_1 = arith.constant 0 : i32
    return %c0_i32, %c0_i32_0 : i32, i32
  }
  func.func @transform_2(%arg0: i32) -> (i32, i32) {
    %c0_i32 = arith.constant 0 : i32
    %c0_i32_0 = arith.constant 0 : i32
    %c0_i32_1 = arith.constant 0 : i32
    return %c0_i32, %c0_i32_0 : i32, i32
  }
  func.func @transform_3(%arg0: i32) -> (i32, i32) {
    %c0_i32 = arith.constant 0 : i32
    %c0_i32_0 = arith.constant 0 : i32
    %c0_i32_1 = arith.constant 0 : i32
    return %c0_i32, %c0_i32_0 : i32, i32
  }
  func.func @transform_4(%arg0: i32) -> (i32, i32) {
    %c0_i32 = arith.constant 0 : i32
    %c0_i32_0 = arith.constant 0 : i32
    %c0_i32_1 = arith.constant 0 : i32
    return %c0_i32, %c0_i32_0 : i32, i32
  }
  func.func @transform_5(%arg0: i32) -> (i32, i32) {
    %c0_i32 = arith.constant 0 : i32
    %c0_i32_0 = arith.constant 0 : i32
    %c0_i32_1 = arith.constant 0 : i32
    return %c0_i32, %c0_i32_0 : i32, i32
  }
  func.func @transform_6(%arg0: i32) -> i32 {
    %c0_i32 = arith.constant 0 : i32
    %c0_i32_0 = arith.constant 0 : i32
    return %c0_i32 : i32
  }
  func.func @transform_7(%arg0: i32) -> (i32, i32) {
    %c0_i32 = arith.constant 0 : i32
    %c0_i32_0 = arith.constant 0 : i32
    return %c0_i32, %arg0 : i32, i32
  }
}

</mosaic_0001>

<bundles_post_ra>
// kernel: tpu_custom_call.1
= control target key start
LH: loop header
LB: loop body
LE: loop exit
PB: predicated region body
PF: predicated region fallthrough
CT: control target
= control target key end

     0   :  { %vm153_vm0 = vcmask 261120   ;;  %v607_v7 = vmov 0   ;;  %s850_s0 = inlined_call_operand.vmem [shape: f32[256,32], index: 0, kind: input, shape index: {}]   ;;  %s851_s1 = inlined_call_operand.vmem [shape: bf16[64,32], index: 1, kind: input, shape index: {}]   ;;  %s852_s2 = inlined_call_operand.vmem [shape: f32[64,1], index: 2, kind: input, shape index: {}]   ;;  %s853_s3 = inlined_call_operand.vmem [shape: bf16[32,64], index: 3, kind: input, shape index: {}]   ;;  %s854_s4 = inlined_call_operand.vmem [shape: f32[32,1], index: 4, kind: input, shape index: {}]   ;;  %s855_s5 = inlined_call_operand.vmem [shape: f32[32,1], index: 5, kind: input, shape index: {}]   ;;  %s856_s6 = inlined_call_operand.<no memory space> [shape: f32[1], index: 6, kind: input, shape index: {}]   ;;  %s857_s7 = inlined_call_operand.hbm [shape: f32[1,256], index: 7, kind: output, shape index: {}]  }
   0x1   :  { %v59_v0 = vld [vmem:[%s850_s0 + $0xf0] sm:$0xff]  ;;  %v60_v1 = vld [vmem:[%s850_s0 + $0xf8] sm:$0xff]  ;;  %v57_v5 = vld [vmem:[%s850_s0 + $0xe0] sm:$0xff]  ;;  %569 = vset.pattern.permute.xlu0 %v607_v7  ;;  %570 = vset.pattern.permute.xlu1 %v607_v7 }
   0x2   :  { %v43_v2 = vld [vmem:[%s850_s0 + $0x70] sm:$0xff]  ;;  %v76_v3 = vpack.c.bf16 %v60_v1, %v59_v0  ;;  %v44_v4 = vld [vmem:[%s850_s0 + $0x78] sm:$0xff]  ;;  %v58_v6 = vld [vmem:[%s850_s0 + $0xe8] sm:$0xff]  ;;  %388 = vmatprep.mubr.bf16.mxu1 %v607_v7 }
   0x3   :  { %v68_v8 = vpack.c.bf16 %v44_v4, %v43_v2  ;;  %v75_v9 = vpack.c.bf16 %v58_v6, %v57_v5  ;;  %v41_v10 = vld [vmem:[%s850_s0 + $0x60] sm:$0xff]  ;;  %v42_v11 = vld [vmem:[%s850_s0 + $0x68] sm:$0xff]  ;;  %v55_v14 = vld [vmem:[%s850_s0 + $0xd0] sm:$0xff] }
   0x4   :  { %558 = vmatprep.subr.msk.bf16.mxu0 %vm153_vm0, %v76_v3  ;;  %v67_v13 = vpack.c.bf16 %v42_v11, %v41_v10  ;;  %v56_v15 = vld [vmem:[%s850_s0 + $0xd8] sm:$0xff]  ;;  %v39_v18 = vld [vmem:[%s850_s0 + $0x50] sm:$0xff]  ;;  %v696_v20 = vld [vmem:[%s851_s1] sm:$0xff]  }
   0x5   :  { %v188_v12 = vsel %vm153_vm0, %v68_v8, 0  ;;  %v74_v17 = vpack.c.bf16 %v56_v15, %v55_v14  ;;  %v40_v19 = vld [vmem:[%s850_s0 + $0x58] sm:$0xff]  ;;  %550 = vmatprep.mubr.msk.bf16.mxu0 %vm153_vm0, %v696_v20  ;;  %v91_v22 = vld [vmem:[%s852_s2 + $0x30] sm:$0xff]  ;;  %v53_v23 = vld [vmem:[%s850_s0 + $0xc0] sm:$0xff] }
   0x6   :  { %535 = vmatpush3.bf16.xpose.msra.mxu0 %v188_v12  ;;  %v185_v16 = vsel %vm153_vm0, %v67_v13, 0  ;;  %v66_v21 = vpack.c.bf16 %v40_v19, %v39_v18  ;;  %v54_v24 = vld [vmem:[%s850_s0 + $0xc8] sm:$0xff]  ;;  %125 = vperm.xlu0 %569, %v91_v22   ;;  %v89_v25 = vld [vmem:[%s852_s2 + $0x20] sm:$0xff]  ;;  %v92_v26 = vld [vmem:[%s852_s2 + $0x38] sm:$0xff] }
   0x7   :  { %559 = vmatprep.subr.msk.bf16.mxu0 %vm153_vm0, %v75_v9  ;;  %115 = vperm.xlu1 %570, %v89_v25   ;;  %v90_v27 = vld [vmem:[%s852_s2 + $0x28] sm:$0xff]  ;;  %v73_v29 = vpack.c.bf16 %v54_v24, %v53_v23  ;;  %v37_v30 = vld [vmem:[%s850_s0 + $0x40] sm:$0xff]  ;;  %v87_v32 = vld [vmem:[%s852_s2 + $0x10] sm:$0xff] }
   0x8   :  { %v182_v28 = vsel %vm153_vm0, %v66_v21, 0  ;;  %v38_v31 = vld [vmem:[%s850_s0 + $0x48] sm:$0xff]  ;;  %v88_v33 = vld [vmem:[%s852_s2 + $0x18] sm:$0xff] }
   0xa   :  { %130 = vperm.xlu0 %569, %v92_v26  }
   0xb   :  { %120 = vperm.xlu1 %570, %v90_v27  }
   0xe   :  { %537 = vmatpush3.bf16.xpose.msra.mxu0 %v185_v16 }
   0xf   :  { %560 = vmatprep.subr.msk.bf16.mxu0 %vm153_vm0, %v74_v17 }
  0x16   :  { %539 = vmatpush3.bf16.xpose.msra.mxu0 %v182_v28 }
  0x17   :  { %13 = vsyncpa [#allocation4], 0  ;;  %561 = vmatprep.subr.msk.bf16.mxu0 %vm153_vm0, %v73_v29  ;;  %v65_v34 = vpack.c.bf16 %v38_v31, %v37_v30  ;;  %v51_v35 = vld [vmem:[%s850_s0 + $0xb0] sm:$0xff]  ;;  %v52_v36 = vld [vmem:[%s850_s0 + $0xb8] sm:$0xff]  ;;  %105 = vperm.xlu0 %569, %v87_v32   ;;  %vm349_vm1 = vcmask 523264  }
  0x18   :  { %110 = vperm.xlu1 %570, %v88_v33   ;;  %v85_v37 = vld [vmem:[%s852_s2] sm:$0xff]  ;;  %v86_v38 = vld [vmem:[%s852_s2 + $0x8] sm:$0xff]  ;;  %v72_v40 = vpack.c.bf16 %v52_v36, %v51_v35  ;;  %v35_v41 = vld [vmem:[%s850_s0 + $0x30] sm:$0xff] }
  0x19   :  { %v179_v39 = vsel %vm153_vm0, %v65_v34, 0  ;;  %v36_v42 = vld [vmem:[%s850_s0 + $0x38] sm:$0xff]  ;;  %v315_v43 = vld [vmem:[%s854_s4] sm:$0xff]  ;;  %v316_v44 = vld [vmem:[%s854_s4 + $0x8] sm:$0xff] }
  0x1a   :  { %v64_v45 = vpack.c.bf16 %v36_v42, %v35_v41  ;;  %v49_v46 = vld [vmem:[%s850_s0 + $0xa0] sm:$0xff]  ;;  %v50_v47 = vld [vmem:[%s850_s0 + $0xa8] sm:$0xff]  ;;  %v317_v48 = vld [vmem:[%s854_s4 + $0x10] sm:$0xff] }
  0x1b   :  { %95 = vperm.xlu0 %569, %v85_v37   ;;  %v318_v49 = vld [vmem:[%s854_s4 + $0x18] sm:$0xff]  ;;  %v71_v51 = vpack.c.bf16 %v50_v47, %v49_v46  ;;  %v33_v52 = vld [vmem:[%s850_s0 + $0x20] sm:$0xff]  ;;  %v34_v53 = vld [vmem:[%s850_s0 + $0x28] sm:$0xff] }
  0x1c   :  { %100 = vperm.xlu1 %570, %v86_v38   ;;  %v176_v50 = vsel %vm153_vm0, %v64_v45, 0  ;;  %v417_v54 = vld [vmem:[%s855_s5] sm:$0xff]  ;;  %v418_v55 = vld [vmem:[%s855_s5 + $0x8] sm:$0xff]  ;;  %v63_v56 = vpack.c.bf16 %v34_v53, %v33_v52  ;;  %v47_v57 = vld [vmem:[%s850_s0 + $0x90] sm:$0xff] }
  0x1d   :  { %v48_v58 = vld [vmem:[%s850_s0 + $0x98] sm:$0xff]  ;;  %v419_v59 = vld [vmem:[%s855_s5 + $0x10] sm:$0xff]  ;;  %v45_v2 = vld [vmem:[%s850_s0 + $0x80] sm:$0xff] }
  0x1e   :  { %541 = vmatpush3.bf16.xpose.msra.mxu0 %v179_v39  ;;  %v420_v60 = vld [vmem:[%s855_s5 + $0x18] sm:$0xff]  ;;  %v173_v61 = vsel %vm153_vm0, %v63_v56, 0  ;;  %v70_v62 = vpack.c.bf16 %v48_v58, %v47_v57  ;;  %v31_v63 = vld [vmem:[%s850_s0 + $0x10] sm:$0xff]  ;;  %v46_v3 = vld [vmem:[%s850_s0 + $0x88] sm:$0xff] }
  0x1f   :  { %562 = vmatprep.subr.msk.bf16.mxu0 %vm153_vm0, %v72_v40  ;;  %321 = vperm.xlu0 %569, %v315_v43   ;;  %v32_v0 = vld [vmem:[%s850_s0 + $0x18] sm:$0xff]  ;;  %v69_v5 = vpack.c.bf16 %v46_v3, %v45_v2  ;;  %v29_v6 = vld [vmem:[%s850_s0] sm:$0xff]  ;;  %v30_v8 = vld [vmem:[%s850_s0 + $0x8] sm:$0xff] }
  0x20   :  { %326 = vperm.xlu1 %570, %v316_v44   ;;  %v62_v1 = vpack.c.bf16 %v32_v0, %v31_v63  ;;  %v61_v9 = vpack.c.bf16 %v30_v8, %v29_v6  ;;  %v572_v11 = vld [vmem:[%s851_s1 + $0x8] sm:$0xff]   ;;  %v573_v12 = vld [vmem:[%s851_s1 + $0x10] sm:$0xff]   ;;  %v574_v13 = vld [vmem:[%s851_s1 + $0x18] sm:$0xff]  }
  0x22   :  { %v170_v4 = vsel %vm153_vm0, %v62_v1, 0  ;;  %v167_v10 = vsel %vm153_vm0, %v61_v9, 0 }
  0x23   :  { %331 = vperm.xlu0 %569, %v317_v48  }
  0x24   :  { %336 = vperm.xlu1 %570, %v318_v49  }
  0x26   :  { %543 = vmatpush3.bf16.xpose.msra.mxu0 %v176_v50 }
  0x27   :  { %563 = vmatprep.subr.msk.bf16.mxu0 %vm153_vm0, %v71_v51  ;;  %423 = vperm.xlu0 %569, %v417_v54  }
  0x28   :  { %428 = vperm.xlu1 %570, %v418_v55  }
  0x2b   :  { %433 = vperm.xlu0 %569, %v419_v59  }
  0x2c   :  { %438 = vperm.xlu1 %570, %v420_v60  }
  0x2e   :  { %545 = vmatpush3.bf16.xpose.msra.mxu0 %v173_v61 }
  0x2f   :  { %564 = vmatprep.subr.msk.bf16.mxu0 %vm153_vm0, %v70_v62 }
  0x36   :  { %547 = vmatpush3.bf16.xpose.msra.mxu0 %v170_v4 }
  0x37   :  { %565 = vmatprep.subr.msk.bf16.mxu0 %vm153_vm0, %v69_v5 }
  0x3e   :  { %549 = vmatpush3.bf16.xpose.msra.mxu0 %v167_v10 }
  0x45   :  { %551 = vmatmul.mubr.msk.bf16.vlgmr.msra.gmra.mxu0 %vm153_vm0, %v696_v20 }
  0x46   :  { %552 = vmatprep.mubr.msk.bf16.mxu0 %vm153_vm0, %v572_v11 }
  0x4d   :  { %553 = vmatmul.mubr.msk.bf16.gmra.mxu0 %vm153_vm0, %v572_v11 }
  0x4e   :  { %554 = vmatprep.mubr.msk.bf16.mxu0 %vm153_vm0, %v573_v12 }
  0x55   :  { %555 = vmatmul.mubr.msk.bf16.gmra.mxu0 %vm153_vm0, %v573_v12 }
  0x56   :  { %556 = vmatprep.mubr.msk.bf16.mxu0 %vm153_vm0, %v574_v13 }
  0x5d   :  { %557 = vmatmul.mubr.msk.bf16.gmra.mxu0 %vm153_vm0, %v574_v13 }
  0x81   :  { %v126_v25 = vpop.permute.xlu0 %125 }
  0x82   :  { %v116_v23 = vpop.permute.xlu1 %115 }
  0x85   :  { %v131_v30 = vpop.permute.xlu0 %130 }
  0x86   :  { %v121_v28 = vpop.permute.xlu1 %120 }
  0x92   :  { %v106_v41 = vpop.permute.xlu0 %105 }
  0x93   :  { %v111_v36 = vpop.permute.xlu1 %110 }
  0x96   :  { %v96_v60 = vpop.permute.xlu0 %95 }
  0x97   :  { %v101_v53 = vpop.permute.xlu1 %100 }
 0x105   :  { %v248_v14 = vpop.f32.mrf.mxu0 }
 0x106   :  { %v249_v6 = vadd.f32 %v248_v14, %v96_v60  ;;  %v576_v14 = vld [vmem:[%s853_s3 + $0x8] sm:$0xff]  }
 0x107   :  { %v250_v15 = vpop.f32.mrf.mxu0 }
 0x108   :  { %v251_v63 = vadd.f32 %v250_v15, %v96_v60  ;;  %v287_v13 = vmax.f32 %v249_v6, 0.0  ;;  %v575_v15 = vld [vmem:[%s853_s3] sm:$0xff]  }
 0x109   :  { %v252_v16 = vpop.f32.mrf.mxu0 }
 0x10a   :  { %v253_v1 = vadd.f32 %v252_v16, %v101_v53  ;;  %v288_v9 = vmax.f32 %v251_v63, 0.0  ;;  %v322_v16 = vpop.permute.xlu0 %321 }
 0x10b   :  { %v254_v17 = vpop.f32.mrf.mxu0 }
 0x10c   :  { %v255_v57 = vadd.f32 %v254_v17, %v101_v53  ;;  %v289_v10 = vmax.f32 %v253_v1, 0.0 }
 0x10d   :  { %v258_v18 = vpop.f32.mrf.mxu0 }
 0x10e   :  { %v259_v61 = vadd.f32 %v258_v18, %v106_v41  ;;  %v290_v4 = vmax.f32 %v255_v57, 0.0  ;;  %v307_v17 = vpack.c.bf16 %v289_v10, %v287_v13  ;;  %v327_v18 = vpop.permute.xlu1 %326 }
 0x10f   :  { %v260_v19 = vpop.f32.mrf.mxu0 }
 0x110   :  { %v261_v50 = vadd.f32 %v260_v19, %v106_v41  ;;  %v291_v8 = vmax.f32 %v259_v61, 0.0  ;;  %v308_v12 = vpack.c.bf16 %v290_v4, %v288_v9  ;;  %v332_v19 = vpop.permute.xlu0 %331 }
 0x111   :  { %v262_v20 = vpop.f32.mrf.mxu0 }
 0x112   :  { %v263_v54 = vadd.f32 %v262_v20, %v111_v36  ;;  %v292_v0 = vmax.f32 %v261_v50, 0.0 }
 0x113   :  { %v264_v21 = vpop.f32.mrf.mxu0 }
 0x114   :  { %v265_v44 = vadd.f32 %v264_v21, %v111_v36  ;;  %v293_v2 = vmax.f32 %v263_v54, 0.0 }
 0x115   :  { %v268_v22 = vpop.f32.mrf.mxu0 }
 0x116   :  { %v269_v48 = vadd.f32 %v268_v22, %v116_v23  ;;  %v294_v58 = vmax.f32 %v265_v44, 0.0  ;;  %v309_v11 = vpack.c.bf16 %v293_v2, %v291_v8  ;;  %v337_v22 = vpop.permute.xlu1 %336  ;;  %v468_v8 = vstv %s856_s6  ;;  %s609_s6 = smov [#allocation3]  }
 0x117   :  { %v270_v24 = vpop.f32.mrf.mxu0  ;;  %s512_s11 = sshll.u32 %s609_s6, 4  ;;  %s513_s11 = int_to_ptr.vmem [resolvable:$true] %s512_s11 }
 0x118   :  { %v271_v39 = vadd.f32 %v270_v24, %v116_v23  ;;  %v295_v62 = vmax.f32 %v269_v48, 0.0  ;;  %v310_v5 = vpack.c.bf16 %v294_v58, %v292_v0  ;;  %s585_s12 = scalar_lea.vmem %s513_s11, 32  ;;  %p590_p1 = scmp.lt.s32.totalorder %s513_s11, %s513_s11 }
 0x119   :  { %v272_v26 = vpop.f32.mrf.mxu0  ;;  %p586_p0 = scmp.ne.s32.totalorder %s513_s11, %s585_s12  ;;  %p591_p2 = scmp.lt.s32.totalorder %s585_s12, %s585_s12 }
 0x11a   :  { %v273_v42 = vadd.f32 %v272_v26, %v121_v28  ;;  %v296_v51 = vmax.f32 %v271_v39, 0.0  ;;  %v424_v26 = vpop.permute.xlu0 %423 }
 0x11b   :  { %v274_v27 = vpop.f32.mrf.mxu0  ;;  %p592_p3 = por %p591_p2, %p590_p1 }
 0x11c   :  { %v275_v33 = vadd.f32 %v274_v27, %v121_v28  ;;  %v297_v55 = vmax.f32 %v273_v42, 0.0 }
 0x11d   :  { %v278_v29 = vpop.f32.mrf.mxu0  ;;  %p593_p4 = pnand %p592_p3, %p586_p0 }
 0x11e   :  { %v279_v37 = vadd.f32 %v278_v29, %v126_v25  ;;  %v298_v45 = vmax.f32 %v275_v33, 0.0  ;;  %v311_v3 = vpack.c.bf16 %v297_v55, %v295_v62 }
 0x11f   :  { %v280_v31 = vpop.f32.mrf.mxu0 }
 0x120   :  { %v281_v34 = vadd.f32 %v280_v31, %v126_v25  ;;  %v299_v49 = vmax.f32 %v279_v37, 0.0  ;;  %v312_v59 = vpack.c.bf16 %v298_v45, %v296_v51 }
 0x121   :  { %v282_v32 = vpop.f32.mrf.mxu0 }
 0x122   :  { %v283_v35 = vadd.f32 %v282_v32, %v131_v30  ;;  %v300_v46 = vmax.f32 %v281_v34, 0.0  ;;  %v429_v34 = vpop.permute.xlu1 %428 }
 0x123   :  { %v284_v38 = vpop.f32.mrf.mxu0 }
 0x124   :  { %v285_v40 = vadd.f32 %v284_v38, %v131_v30  ;;  %v301_v43 = vmax.f32 %v283_v35, 0.0 }
 0x126   :  { %v302_v47 = vmax.f32 %v285_v40, 0.0  ;;  %v313_v56 = vpack.c.bf16 %v301_v43, %v299_v49  ;;  %v434_v40 = vpop.permute.xlu0 %433  ;;  %v439_v53 = vpop.permute.xlu1 %438 }
 0x128   :  { %v314_v52 = vpack.c.bf16 %v302_v47, %v300_v46 }
 0x12a   :  { %364 = vmatprep.subr.bf16.mxu1 %v314_v52 }
 0x12b   :  { %365 = vmatpush1.bf16.msra.mxu1 %v313_v56 }
 0x12c   :  { %366 = vmatprep.subr.bf16.mxu1 %v312_v59 }
 0x12f   :  { %367 = vmatpush1.bf16.msra.mxu1 %v311_v3 }
 0x130   :  { %368 = vmatprep.subr.bf16.mxu1 %v310_v5 }
 0x133   :  { %369 = vmatpush1.bf16.msra.mxu1 %v309_v11 }
 0x134   :  { %370 = vmatprep.subr.bf16.mxu1 %v308_v12 }
 0x137   :  { %371 = vmatpush1.bf16.msra.mxu1 %v307_v17 }
 0x13a   :  { %530 = vmatmul.mubr.msk.bf16.vlgmr.msra.gmra.mxu1 %vm349_vm1, %v575_v15 }
 0x13b   :  { %398 = vmatprep.mubr.bf16.mxu1 %v607_v7 }
 0x142   :  { %531 = vmatmul.mubr.msk.bf16.gmra.mxu1 %vm349_vm1, %v576_v14 }
 0x1fa   :  { %v390_v20 = vpop.f32.mrf.mxu1 }
 0x1fb   :  { %v391_v23 = vadd.f32 %v390_v20, %v322_v16  ;;  %v608_v20 = vmov 1966171168  }
 0x1fc   :  { %v392_v21 = vpop.f32.mrf.mxu1 }
 0x1fd   :  { %v393_v27 = vadd.f32 %v392_v21, %v322_v16  ;;  %v409_v7 = vmax.f32 %v391_v23, 0.0  ;;  %v487_v21 = vunpack.c.l.s4 %v608_v20 }
 0x1fe   :  { %v394_v24 = vpop.f32.mrf.mxu1 }
 0x1ff   :  { %v395_v25 = vadd.f32 %v394_v24, %v327_v18  ;;  %v410_v35 = vmax.f32 %v393_v27, 0.0  ;;  %v441_v41 = vmul.f32 %v424_v26, %v409_v7  ;;  %v488_v23 = vunpack.c.0.s8 %v487_v21 }
 0x200   :  { %v396_v28 = vpop.f32.mrf.mxu1 }
 0x201   :  { %v411_v29 = vmax.f32 %v395_v25, 0.0  ;;  %v397_v30 = vadd.f32 %v396_v28, %v327_v18  ;;  %v442_v47 = vmul.f32 %v424_v26, %v410_v35 }
 0x202   :  { %v400_v31 = vpop.f32.mrf.mxu1 }
 0x203   :  { %v412_v32 = vmax.f32 %v397_v30, 0.0  ;;  %v401_v33 = vadd.f32 %v400_v31, %v332_v19  ;;  %v443_v37 = vmul.f32 %v429_v34, %v411_v29 }
 0x204   :  { %v402_v36 = vpop.f32.mrf.mxu1 }
 0x205   :  { %v413_v38 = vmax.f32 %v401_v33, 0.0  ;;  %v403_v39 = vadd.f32 %v402_v36, %v332_v19  ;;  %v444_v43 = vmul.f32 %v429_v34, %v412_v32  ;;  %v449_v49 = vadd.f32 %v443_v37, %v441_v41 }
 0x206   :  { %v404_v42 = vpop.f32.mrf.mxu1 }
 0x207   :  { %v445_v44 = vmul.f32 %v434_v40, %v413_v38  ;;  %v414_v45 = vmax.f32 %v403_v39, 0.0  ;;  %v405_v46 = vadd.f32 %v404_v42, %v337_v22  ;;  %v458_v54 = vadd.f32 %v444_v43, %v442_v47 }
 0x208   :  { %v406_v48 = vpop.f32.mrf.mxu1 }
 0x209   :  { %v446_v50 = vmul.f32 %v434_v40, %v414_v45  ;;  %v415_v51 = vmax.f32 %v405_v46, 0.0  ;;  %v407_v52 = vadd.f32 %v406_v48, %v337_v22  ;;  %v450_v55 = vadd.f32 %v449_v49, %v445_v44 }
 0x20a   :  { %v489_v22 = vlaneseq }
 0x20b   :  { %v447_v56 = vmul.f32 %v439_v53, %v415_v51  ;;  %v416_v57 = vmax.f32 %v407_v52, 0.0  ;;  %v459_v58 = vadd.f32 %v458_v54, %v446_v50 }
 0x20c   :  { %v490_v24 = vshrl.u32 %v489_v22, 7  ;;  %vm503_vm2 = vcmp.lt.s32.totalorder %v489_v22, 256 }
 0x20d   :  { %v451_v59 = vadd.f32 %v450_v55, %v447_v56  ;;  %v448_v60 = vmul.f32 %v439_v53, %v416_v57 }
 0x20e   :  { %v491_v26 = vsub.s32 %v488_v23, %v490_v24 }
 0x20f   :  { %v452_v61 = vrot.slane %v451_v59, 4  ;;  %v460_v62 = vadd.f32 %v459_v58, %v448_v60 }
 0x211   :  { %v453_v63 = vadd.f32 %v452_v61, %v451_v59  ;;  %v461_v0 = vrot.slane %v460_v62, 4 }
 0x213   :  { %v454_v1 = vrot.slane %v453_v63, 2  ;;  %v462_v2 = vadd.f32 %v461_v0, %v460_v62 }
 0x215   :  { %v455_v3 = vadd.f32 %v454_v1, %v453_v63  ;;  %v463_v4 = vrot.slane %v462_v2, 2 }
 0x217   :  { %v456_v5 = vrot.slane %v455_v3, 1  ;;  %v464_v6 = vadd.f32 %v463_v4, %v462_v2 }
 0x219   :  { %v457_v9 = vadd.f32 %v456_v5, %v455_v3  ;;  %v465_v10 = vrot.slane %v464_v6, 1 }
 0x21b   :  { %v469_v11 = vadd.f32 %v468_v8, %v457_v9  ;;  %v466_v12 = vadd.f32 %v465_v10, %v464_v6 }
 0x21d   :  { %v532_v13 = vmul.f32 -1.442695, %v469_v11  ;;  %v470_v17 = vadd.f32 %v468_v8, %v466_v12 }
 0x21f   :  { %577 = vpow2.f32 %v532_v13  ;;  %v533_v15 = vmul.f32 -1.442695, %v470_v17 }
 0x221   :  { %579 = vpow2.f32 %v533_v15 }
 0x22c   :  { %v578_v14 = vpop.eup %577 }
 0x22d   :  { %v477_v16 = vadd.f32 1.0, %v578_v14 }
 0x22e   :  { %v580_v18 = vpop.eup %579 }
 0x22f   :  { %v478_v19 = vadd.f32 1.0, %v580_v18  ;;  %581 = vrcp.f32 %v477_v16 }
 0x231   :  { %583 = vrcp.f32 %v478_v19 }
 0x23c   :  { %v582_v25 = vpop.eup %581 }
 0x23e   :  { %v584_v27 = vpop.eup %583 }
 0x23f   :  { %v485_v28 = vcombine.low %v582_v25, %v584_v27 }
 0x241   :  { %v492_v29 = vrot.slane %v485_v28, %v491_v26 }
 0x243   :  { %v499_v30 = vrot.slane %v492_v29, %v491_v26 }
 0x245   :  { %505 = vst.msk [vmem:[#allocation3] sm:$0x3] %vm503_vm2, %v499_v30 }
 0x246   :  { %596 = shalt.err (!%p593_p4)
}
 0x247   :  { %515 = dma.vmem_to_hbm [thread:$0]  %s513_s11, 32, %s857_s7, [#allocation4]  }
 0x248   :  { %605 = dma.done.wait [#allocation4], 32  }
 0x249   :  { %606 = vsyncadd [#allocation4], 4294967264 }
 0x24a   :  { %519 = vsyncpa [#allocation4], 1 }

</bundles_post_ra>
